<compile_context>
chip_gen: v6e
topology: v6e:2x2x1
jax: 0.10.0
libtpu: 0.0.40
codegen_flags: <defaults>
</compile_context>

<pallas_src>
import jax
import jax.numpy as jnp
from jax import lax
from jax.experimental import pallas as pl
from jax.experimental.pallas import tpu as pltpu


def _round_up(x, m):
    return (x + m - 1) // m * m


def _vmem_capacity_bytes():
    try:
        return int(pltpu.get_tpu_info().vmem_capacity_bytes)
    except Exception:
        return 64 * 1024 * 1024  # conservative fallback (v7x physical VMEM)


# ----------------------------- Pallas kernel -------------------------------
def _make_kernel(n_feat, c_pad):
    def kernel(ids_ref, xc_ref, p_cat_ref, w1c_ref, b1_ref, w2_ref, b2_ref,
               out_ref):
        tb = out_ref.shape[1]
        # Multi-hot over the (offset) category ids: column j has a 1 at row
        # (offset_f + x_cat[j, f]) for every feature f.  Built on the VPU,
        # consumed by the MXU (exact 0/1 values, so bf16 is lossless here).
        iota = lax.broadcasted_iota(jnp.int32, (c_pad, tb), 0)
        hit = iota == ids_ref[pl.ds(0, 1), :]
        for f in range(1, n_feat):
            hit = hit | (iota == ids_ref[pl.ds(f, 1), :])
        mh = jnp.where(hit, 1.0, 0.0).astype(jnp.bfloat16)        # (c_pad, tb)

        # lin1 (+bn1 folded): embeddings via pre-projected tables (bf16 MXU),
        # continuous features in f32; bias broadcast along lanes.
        h = (jnp.dot(p_cat_ref[...], mh, preferred_element_type=jnp.float32)
             + jnp.dot(w1c_ref[...], xc_ref[...],
                       preferred_element_type=jnp.float32)
             + b1_ref[...])
        h = jnp.maximum(h, 0.0)                                    # ReLU

        # lin2 (+bn2 folded), all f32 (w2 is tiny and VMEM-resident).
        out_ref[...] = (
            jnp.dot(w2_ref[...], h, preferred_element_type=jnp.float32)
            + b2_ref[...]).astype(out_ref.dtype)

    return kernel


# ------------------------------- Wrapper ------------------------------------
def nn_model_forward(x_cat, x_cont, params, *, block_b=None):
    """Fused embeddings + BN-folded MLP, feature-major Pallas kernel."""
    emb_tables = params["emb_tables"]
    n_feat = len(emb_tables)
    cats = [int(t.shape[0]) for t in emb_tables]
    dims = [int(t.shape[1]) for t in emb_tables]
    n_emb = sum(dims)
    B = int(x_cat.shape[0])
    n_cont = int(x_cont.shape[1])
    H = int(params["w1"].shape[1])          # 200
    O = int(params["w2"].shape[1])          # 5

    Hp = _round_up(H, 128)                  # hidden        200 -> 256
    Op = _round_up(max(O, 8), 8)            # output        5   -> 8
    Cp = _round_up(max(sum(cats), 16), 16)  # total cats    22  -> 32
    NCp = _round_up(max(n_cont, 8), 8)      # continuous    4   -> 8

    f32 = jnp.float32
    eps = 1e-5

    # ---- Constant-fold BatchNorm running stats into the linear layers ----
    bn1_scale = params["bn1_gamma"] * lax.rsqrt(params["bn1_var"] + eps)
    bn1_shift = params["bn1_beta"] - params["bn1_mean"] * bn1_scale
    bn2_scale = params["bn2_gamma"] * lax.rsqrt(params["bn2_var"] + eps)
    bn2_shift = params["bn2_beta"] - params["bn2_mean"] * bn2_scale

    w1 = params["w1"].astype(f32)                          # (n_emb+n_cont, H)
    w1_emb, w1_cont_raw = w1[:n_emb], w1[n_emb:]
    b1 = params["b1"].astype(f32) + bn1_shift @ w1_cont_raw          # (H,)
    w1_cont = bn1_scale[:, None] * w1_cont_raw                       # (n_cont,H)
    w2 = bn2_scale[:, None] * params["w2"].astype(f32)               # (H, O)
    b2 = params["b2"].astype(f32) + bn2_shift @ params["w2"].astype(f32)

    # ---- Pre-project each embedding table through its W1 row block ----
    projs, off = [], 0
    for t, d in zip(emb_tables, dims):
        projs.append(t.astype(f32) @ w1_emb[off:off + d])            # (cats_f,H)
        off += d
    P = jnp.concatenate(projs, axis=0)                               # (sumC, H)

    # Feature-major, zero-padded resident operands.
    p_catT = jnp.pad(P.T, ((0, Hp - H), (0, Cp - sum(cats)))).astype(jnp.bfloat16)
    w1cT = jnp.pad(w1_cont.T, ((0, Hp - H), (0, NCp - n_cont)))      # (Hp,NCp) f32
    b1c = jnp.pad(b1, (0, Hp - H)).reshape(Hp, 1)                    # (Hp, 1)
    w2T = jnp.pad(w2.T, ((0, Op - O), (0, Hp - H)))                  # (Op, Hp)
    b2c = jnp.pad(b2, (0, Op - O)).reshape(Op, 1)                    # (Op, 1)

    # ---- Batch tiling: big lane-aligned tiles, >= MIN_STEPS steps if possible
    vmem_cap = _vmem_capacity_bytes()
    if block_b is None:
        # ~2 KB/row of VMEM temporaries (dominated by the (Hp, tb) f32 hidden
        # activation): 16K rows on 128-MiB parts (v5e/v6e), 8K on v7x.
        block_b = 16384 if vmem_cap >= 100 * 1024 * 1024 else 8192
    LANE = 128
    MIN_STEPS = 8                            # keep both v7x TensorCores busy
    tb_cap = max(LANE, (int(block_b) // LANE) * LANE)
    tb = max(LANE, min(tb_cap, _round_up(pl.cdiv(B, MIN_STEPS), LANE)))
    B_pad = _round_up(B, tb)

    # ---- Feature-major activation streams (only ids + continuous) ----
    offs, acc = [], 0
    for c in cats:
        offs.append(acc)
        acc += c
    offsets = jnp.asarray(offs, jnp.int32)                           # (n_feat,)

    idsT = (x_cat.astype(jnp.int32) + offsets[None, :]).T            # (n_feat,B)
    idsT = jnp.pad(idsT, ((0, 0), (0, B_pad - B)))
    xcT = jnp.pad(x_cont.astype(f32).T,
                  ((0, NCp - n_cont), (0, B_pad - B)))               # (NCp,B_pad)

    grid = (B_pad // tb,)
    in_specs = [
        pl.BlockSpec((n_feat, tb), lambda i: (0, i)),   # category ids (int32)
        pl.BlockSpec((NCp, tb), lambda i: (0, i)),      # continuous features
        pl.BlockSpec((Hp, Cp), lambda i: (0, 0)),       # projected emb tables
        pl.BlockSpec((Hp, NCp), lambda i: (0, 0)),      # W1_cont^T (bn1 folded)
        pl.BlockSpec((Hp, 1), lambda i: (0, 0)),        # b1
        pl.BlockSpec((Op, Hp), lambda i: (0, 0)),       # W2^T (bn2 folded)
        pl.BlockSpec((Op, 1), lambda i: (0, 0)),        # b2
    ]
    out_spec = pl.BlockSpec((Op, tb), lambda i: (0, i))

    flops = 2 * B_pad * (Cp * Hp + NCp * Hp + Hp * Op)
    bytes_accessed = (B_pad * (n_feat + NCp + Op) * 4
                      + Hp * Cp * 2 + (Hp * NCp + Hp + Op * Hp + Op) * 4)
    cost = pl.CostEstimate(flops=int(flops), transcendentals=0,
                           bytes_accessed=int(bytes_accessed))

    outT = pl.pallas_call(
        _make_kernel(n_feat, Cp),
        out_shape=jax.ShapeDtypeStruct((Op, B_pad), jnp.float32),
        grid=grid,
        in_specs=in_specs,
        out_specs=out_spec,
        compiler_params=pltpu.CompilerParams(
            dimension_semantics=("parallel",),
            vmem_limit_bytes=int(vmem_cap * 3 // 4),
        ),
        cost_estimate=cost,
    )(idsT, xcT, p_catT, w1cT, b1c, w2T, b2c)

    return outT[:O, :B].T                                            # (B, O)


# ------------------------------ Param setup --------------------------------
def make_params(key, embedding_sizes, n_cont, hidden=200, n_out=5):
    keys = jax.random.split(key, 16)
    emb_tables = []
    for i, (cats, dim) in enumerate(embedding_sizes):
        emb_tables.append(
            jax.random.normal(keys[i], (cats, dim), jnp.float32) * 0.1)
    n_emb = sum(d for _, d in embedding_sizes)
    n_in = n_emb + n_cont

    k = keys[len(embedding_sizes):]
    params = dict(
        emb_tables=emb_tables,
        w1=jax.random.normal(k[0], (n_in, hidden), jnp.float32) * (1.0 / jnp.sqrt(n_in)),
        b1=jax.random.normal(k[1], (hidden,), jnp.float32) * 0.01,
        w2=jax.random.normal(k[2], (hidden, n_out), jnp.float32) * (1.0 / jnp.sqrt(hidden)),
        b2=jax.random.normal(k[3], (n_out,), jnp.float32) * 0.01,
        bn1_gamma=1.0 + 0.1 * jax.random.normal(k[4], (n_cont,), jnp.float32),
        bn1_beta=0.1 * jax.random.normal(k[5], (n_cont,), jnp.float32),
        bn1_mean=0.05 * jax.random.normal(k[6], (n_cont,), jnp.float32),
        bn1_var=jnp.abs(1.0 + 0.1 * jax.random.normal(k[7], (n_cont,), jnp.float32)),
        bn2_gamma=1.0 + 0.1 * jax.random.normal(k[8], (hidden,), jnp.float32),
        bn2_beta=0.1 * jax.random.normal(k[9], (hidden,), jnp.float32),
        bn2_mean=0.05 * jax.random.normal(k[10], (hidden,), jnp.float32),
        bn2_var=jnp.abs(1.0 + 0.1 * jax.random.normal(k[11], (hidden,), jnp.float32)),
    )
    return params


# ------------------------------- Reference ---------------------------------
def reference_forward(x_cat, x_cont, params):
    eps = 1e-5
    x_emb = jnp.concatenate(
        [tbl[x_cat[:, i]] for i, tbl in enumerate(params["emb_tables"])], axis=1)
    x2 = (x_cont - params["bn1_mean"]) / jnp.sqrt(params["bn1_var"] + eps) \
        * params["bn1_gamma"] + params["bn1_beta"]
    x = jnp.concatenate([x_emb, x2], axis=1)
    h = jnp.maximum(
        jnp.dot(x, params["w1"], precision=lax.Precision.HIGHEST) + params["b1"], 0.0)
    h = (h - params["bn2_mean"]) / jnp.sqrt(params["bn2_var"] + eps) \
        * params["bn2_gamma"] + params["bn2_beta"]
    return jnp.dot(h, params["w2"], precision=lax.Precision.HIGHEST) + params["b2"]


# --------------------------------- Main -------------------------------------
if __name__ == "__main__":
    key = jax.random.PRNGKey(0)
    embedding_sizes = [(10, 4), (7, 3), (5, 2)]   # n_emb = 9
    n_cont = 4

    k_param, k_cat, k_cont = jax.random.split(key, 3)
    params = make_params(k_param, embedding_sizes, n_cont)

    def make_inputs(batch, salt):
        xc = jnp.stack(
            [jax.random.randint(jax.random.fold_in(k_cat, 131 * salt + i),
                                (batch,), 0, cats)
             for i, (cats, _) in enumerate(embedding_sizes)],
            axis=1).astype(jnp.int32)
        xq = jax.random.normal(jax.random.fold_in(k_cont, salt),
                               (batch, n_cont), jnp.float32)
        return xc, xq

    # Small check (single grid step).
    x_cat, x_cont = make_inputs(8, 0)
    out = nn_model_forward(x_cat, x_cont, params)
    jax.block_until_ready(out)
    ref = reference_forward(x_cat, x_cont, params)
    assert out.shape == (8, 5)
    assert jnp.allclose(out, ref, atol=2e-2, rtol=2e-2), (
        f"mismatch vs reference: max abs diff = {jnp.max(jnp.abs(out - ref))}")

    # Larger check: exercises batch padding + a multi-step grid.
    x_cat2, x_cont2 = make_inputs(333, 1)
    out2 = nn_model_forward(x_cat2, x_cont2, params)
    jax.block_until_ready(out2)
    ref2 = reference_forward(x_cat2, x_cont2, params)
    assert out2.shape == (333, 5)
    assert jnp.allclose(out2, ref2, atol=2e-2, rtol=2e-2), (
        f"mismatch vs reference: max abs diff = {jnp.max(jnp.abs(out2 - ref2))}")

    print("KERNEL_OK")
</pallas_src>

<mosaic_0001>
module attributes {stable_mosaic.version = 11 : i64} {
  func.func @kernel(%arg0: i32, %arg1: memref<3x128xi32, #tpu.memory_space<vmem>>, %arg2: memref<8x128xf32, #tpu.memory_space<vmem>>, %arg3: memref<256x32xbf16, #tpu.memory_space<vmem>>, %arg4: memref<256x8xf32, #tpu.memory_space<vmem>>, %arg5: memref<256x1xf32, #tpu.memory_space<vmem>>, %arg6: memref<8x256xf32, #tpu.memory_space<vmem>>, %arg7: memref<8x1xf32, #tpu.memory_space<vmem>>, %arg8: memref<8x128xf32, #tpu.memory_space<vmem>>) attributes {dimension_semantics = [#tpu.dimension_semantics<parallel>], iteration_bounds = array<i64: 1>, scalar_prefetch = 0 : i64, scratch_operands = 0 : i64, tpu.core_type = #tpu.core_type<tc>, window_params = [{transform_indices = @transform_0, window_bounds = array<i64: 3, 128>}, {transform_indices = @transform_1, window_bounds = array<i64: 8, 128>}, {pipeline_mode = #tpu.pipeline_mode<synchronous>, transform_indices = @transform_2, window_bounds = array<i64: 256, 32>}, {pipeline_mode = #tpu.pipeline_mode<synchronous>, transform_indices = @transform_3, window_bounds = array<i64: 256, 8>}, {pipeline_mode = #tpu.pipeline_mode<synchronous>, transform_indices = @transform_4, window_bounds = array<i64: 256, 1>}, {pipeline_mode = #tpu.pipeline_mode<synchronous>, transform_indices = @transform_5, window_bounds = array<i64: 8, 256>}, {pipeline_mode = #tpu.pipeline_mode<synchronous>, transform_indices = @transform_6, window_bounds = array<i64: 8, 1>}, {transform_indices = @transform_7, window_bounds = array<i64: 8, 128>}]} {
    %0 = tpu.iota {dimensions = array<i32: 0>} : vector<32x128xi32>
    %c0 = arith.constant 0 : index
    %c0_0 = arith.constant 0 : index
    %1 = vector.load %arg1[%c0, %c0_0] : memref<3x128xi32, #tpu.memory_space<vmem>>, vector<1x128xi32>
    %2 = vector.broadcast %1 : vector<1x128xi32> to vector<32x128xi32>
    %3 = arith.cmpi eq, %0, %2 : vector<32x128xi32>
    %c1 = arith.constant 1 : index
    %c0_1 = arith.constant 0 : index
    %4 = vector.load %arg1[%c1, %c0_1] : memref<3x128xi32, #tpu.memory_space<vmem>>, vector<1x128xi32>
    %5 = vector.broadcast %4 : vector<1x128xi32> to vector<32x128xi32>
    %6 = arith.cmpi eq, %0, %5 : vector<32x128xi32>
    %7 = arith.ori %3, %6 : vector<32x128xi1>
    %c2 = arith.constant 2 : index
    %c0_2 = arith.constant 0 : index
    %8 = vector.load %arg1[%c2, %c0_2] : memref<3x128xi32, #tpu.memory_space<vmem>>, vector<1x128xi32>
    %9 = vector.broadcast %8 : vector<1x128xi32> to vector<32x128xi32>
    %10 = arith.cmpi eq, %0, %9 : vector<32x128xi32>
    %11 = arith.ori %7, %10 : vector<32x128xi1>
    %cst = arith.constant 1.000000e+00 : f32
    %cst_3 = arith.constant 0.000000e+00 : f32
    %12 = vector.broadcast %cst : f32 to vector<32x128xf32>
    %13 = vector.broadcast %cst_3 : f32 to vector<32x128xf32>
    %14 = arith.select %11, %12, %13 : vector<32x128xi1>, vector<32x128xf32>
    %15 = arith.truncf %14 : vector<32x128xf32> to vector<32x128xbf16>
    %c0_4 = arith.constant 0 : index
    %c0_5 = arith.constant 0 : index
    %16 = vector.load %arg3[%c0_4, %c0_5] : memref<256x32xbf16, #tpu.memory_space<vmem>>, vector<256x32xbf16>
    %cst_6 = arith.constant dense<0.000000e+00> : vector<256x128xf32>
    %17 = tpu.matmul %16, %15, %cst_6 {dimension_numbers = #tpu.dot_dimension_numbers<[1], [0], [0], [1], [0, 0, 1, 1], [], []>} : vector<256x32xbf16>, vector<32x128xbf16>, vector<256x128xf32> -> vector<256x128xf32>
    %c0_7 = arith.constant 0 : index
    %c0_8 = arith.constant 0 : index
    %18 = vector.load %arg4[%c0_7, %c0_8] : memref<256x8xf32, #tpu.memory_space<vmem>>, vector<256x8xf32>
    %c0_9 = arith.constant 0 : index
    %c0_10 = arith.constant 0 : index
    %19 = vector.load %arg2[%c0_9, %c0_10] : memref<8x128xf32, #tpu.memory_space<vmem>>, vector<8x128xf32>
    %cst_11 = arith.constant dense<0.000000e+00> : vector<256x128xf32>
    %20 = tpu.matmul %18, %19, %cst_11 {dimension_numbers = #tpu.dot_dimension_numbers<[1], [0], [0], [1], [0, 0, 1, 1], [], []>} : vector<256x8xf32>, vector<8x128xf32>, vector<256x128xf32> -> vector<256x128xf32>
    %21 = arith.addf %17, %20 : vector<256x128xf32>
    %c0_12 = arith.constant 0 : index
    %c0_13 = arith.constant 0 : index
    %22 = vector.load %arg5[%c0_12, %c0_13] : memref<256x1xf32, #tpu.memory_space<vmem>>, vector<256x1xf32>
    %23 = vector.broadcast %22 : vector<256x1xf32> to vector<256x128xf32>
    %24 = arith.addf %21, %23 : vector<256x128xf32>
    %cst_14 = arith.constant 0.000000e+00 : f32
    %25 = vector.broadcast %cst_14 : f32 to vector<256x128xf32>
    %26 = arith.maximumf %24, %25 : vector<256x128xf32>
    %c0_15 = arith.constant 0 : index
    %c0_16 = arith.constant 0 : index
    %27 = vector.load %arg6[%c0_15, %c0_16] : memref<8x256xf32, #tpu.memory_space<vmem>>, vector<8x256xf32>
    %cst_17 = arith.constant dense<0.000000e+00> : vector<8x128xf32>
    %28 = tpu.matmul %27, %26, %cst_17 {dimension_numbers = #tpu.dot_dimension_numbers<[1], [0], [0], [1], [0, 0, 1, 1], [], []>} : vector<8x256xf32>, vector<256x128xf32>, vector<8x128xf32> -> vector<8x128xf32>
    %c0_18 = arith.constant 0 : index
    %c0_19 = arith.constant 0 : index
    %29 = vector.load %arg7[%c0_18, %c0_19] : memref<8x1xf32, #tpu.memory_space<vmem>>, vector<8x1xf32>
    %30 = vector.broadcast %29 : vector<8x1xf32> to vector<8x128xf32>
    %31 = arith.addf %28, %30 : vector<8x128xf32>
    %c0_20 = arith.constant 0 : index
    %c0_21 = arith.constant 0 : index
    %32 = vector.load %arg8[%c0_20, %c0_21] : memref<8x128xf32, #tpu.memory_space<vmem>>, vector<8x128xf32>
    tpu.vector_store %arg8[%c0_20, %c0_21], %31 {strides = array<i32>} : memref<8x128xf32, #tpu.memory_space<vmem>>, vector<8x128xf32>,
    return
  }
  func.func @transform_0(%arg0: i32) -> (i32, i32) {
    %c0_i32 = arith.constant 0 : i32
    %c0_i32_0 = arith.constant 0 : i32
    return %c0_i32, %arg0 : i32, i32
  }
  func.func @transform_1(%arg0: i32) -> (i32, i32) {
    %c0_i32 = arith.constant 0 : i32
    %c0_i32_0 = arith.constant 0 : i32
    return %c0_i32, %arg0 : i32, i32
  }
  func.func @transform_2(%arg0: i32) -> (i32, i32) {
    %c0_i32 = arith.constant 0 : i32
    %c0_i32_0 = arith.constant 0 : i32
    %c0_i32_1 = arith.constant 0 : i32
    return %c0_i32, %c0_i32_0 : i32, i32
  }
  func.func @transform_3(%arg0: i32) -> (i32, i32) {
    %c0_i32 = arith.constant 0 : i32
    %c0_i32_0 = arith.constant 0 : i32
    %c0_i32_1 = arith.constant 0 : i32
    return %c0_i32, %c0_i32_0 : i32, i32
  }
  func.func @transform_4(%arg0: i32) -> (i32, i32) {
    %c0_i32 = arith.constant 0 : i32
    %c0_i32_0 = arith.constant 0 : i32
    %c0_i32_1 = arith.constant 0 : i32
    return %c0_i32, %c0_i32_0 : i32, i32
  }
  func.func @transform_5(%arg0: i32) -> (i32, i32) {
    %c0_i32 = arith.constant 0 : i32
    %c0_i32_0 = arith.constant 0 : i32
    %c0_i32_1 = arith.constant 0 : i32
    return %c0_i32, %c0_i32_0 : i32, i32
  }
  func.func @transform_6(%arg0: i32) -> (i32, i32) {
    %c0_i32 = arith.constant 0 : i32
    %c0_i32_0 = arith.constant 0 : i32
    %c0_i32_1 = arith.constant 0 : i32
    return %c0_i32, %c0_i32_0 : i32, i32
  }
  func.func @transform_7(%arg0: i32) -> (i32, i32) {
    %c0_i32 = arith.constant 0 : i32
    %c0_i32_0 = arith.constant 0 : i32
    return %c0_i32, %arg0 : i32, i32
  }
}

</mosaic_0001>

<bundles_post_ra>
// kernel: tpu_custom_call.1
= control target key start
LH: loop header
LB: loop body
LE: loop exit
PB: predicated region body
PF: predicated region fallthrough
CT: control target
= control target key end

     0   :  { %v28_v1 = vlaneseq  ;;  %vm139_vm0 = vcmask 64512   ;;  %vm541_vm1 = vcmask 261120   ;;  %v1386_v13 = vmov 0   ;;  %s1933_s0 = inlined_call_operand.vmem [shape: s32[3,128], index: 0, kind: input, shape index: {}]   ;;  %s1934_s1 = inlined_call_operand.vmem [shape: f32[8,128], index: 1, kind: input, shape index: {}]   ;;  %s1935_s2 = inlined_call_operand.vmem [shape: bf16[256,32], index: 2, kind: input, shape index: {}]   ;;  %s1936_s3 = inlined_call_operand.vmem [shape: f32[256,8], index: 3, kind: input, shape index: {}]   ;;  %s1937_s4 = inlined_call_operand.vmem [shape: f32[256,1], index: 4, kind: input, shape index: {}]   ;;  %s1938_s5 = inlined_call_operand.vmem [shape: f32[8,256], index: 5, kind: input, shape index: {}]   ;;  %s1939_s6 = inlined_call_operand.vmem [shape: f32[8,1], index: 6, kind: input, shape index: {}]   ;;  %s1940_s7 = inlined_call_operand.hbm [shape: f32[8,128], index: 7, kind: output, shape index: {}]  }
   0x1   :  { %v138_v0 = vld [vmem:[%s1934_s1] sm:$0xff]  ;;  %v107_v5 = vld [vmem:[%s1936_s3 + $0x8] sm:$0xff]  ;;  %v108_v8 = vld [vmem:[%s1936_s3 + $0x10] sm:$0xff]  ;;  %1347 = vset.pattern.permute.xlu1 %v1386_v13  ;;  %1346 = vset.pattern.permute.xlu0 %v1386_v13  ;;  %v1387_v22 = vmov 1.0|1.0  }
   0x2   :  { %1257 = vmatprep.subr.mxu0 %v138_v0  ;;  %v1100_v2 = vld [vmem:[%s1933_s0] ss:$0 sm:$0xff]  ;;  %v1101_v3 = vld [vmem:[%s1933_s0 + $0x1] ss:$0 sm:$0xff]  ;;  %v29_v6 = vshrl.u32 %v28_v1, 7  ;;  %v109_v12 = vld [vmem:[%s1936_s3 + $0x18] sm:$0xff] }
   0x3   :  { %v106_v4 = vld [vmem:[%s1936_s3] sm:$0xff]  ;;  %1258 = vmatpush3.msra.mxu0 %v138_v0  ;;  %v111_v17 = vld [vmem:[%s1936_s3 + $0x28] sm:$0xff]  ;;  %v112_v19 = vld [vmem:[%s1936_s3 + $0x30] sm:$0xff] }
   0x4   :  { %v1102_v7 = vld [vmem:[%s1933_s0 + $0x2] ss:$0 sm:$0xff]  ;;  %1259 = vmatprep.mubr.msk.f32.mxu0 %vm139_vm0, %v106_v4  ;;  %v31_v10 = vadd.s32 16, %v29_v6  ;;  %v32_v11 = vadd.s32 24, %v29_v6  ;;  %vm38_vm2 = vcmp.eq.s32.totalorder %v29_v6, %v1100_v2  ;;  %v30_v14 = vadd.s32 8, %v29_v6  ;;  %v781_v20 = vld [vmem:[%s1937_s4 + $0xf0] sm:$0xff] }
   0x5   :  { %1260 = vmatmul.mubr.msk.f32.vlgmr.msra.gmra.mxu0 %vm139_vm0, %v107_v5  ;;  %v1348_v9 = vld [vmem:[%s1935_s2] sm:$0xff]   ;;  %vm47_vm3 = vcmp.eq.s32.totalorder %v29_v6, %v1101_v3  ;;  %v113_v21 = vld [vmem:[%s1936_s3 + $0x38] sm:$0xff]  ;;  %935 = vperm.xlu1 %1347, %v781_v20   ;;  %v765_v24 = vld [vmem:[%s1937_s4 + $0x70] sm:$0xff] }
   0x6   :  { %1262 = vmatprep.mubr.msk.f32.mxu0 %vm139_vm0, %v108_v8  ;;  %1311 = vmatprep.mubr.msk.bf16.mxu1 %vm541_vm1, %v1348_v9  ;;  %v110_v15 = vld [vmem:[%s1936_s3 + $0x20] sm:$0xff]  ;;  %vm40_vm4 = vcmp.eq.s32.totalorder %v31_v10, %v1100_v2  ;;  %vm41_vm5 = vcmp.eq.s32.totalorder %v32_v11, %v1100_v2  ;;  %vm49_vm6 = vcmp.eq.s32.totalorder %v31_v10, %v1101_v3  ;;  %vm1463_vm8 = vmor %vm38_vm2, %vm47_vm3  ;;  %v1349_v25 = vld [vmem:[%s1935_s2 + $0x8] sm:$0xff]  }
   0x7   :  { %vm50_vm7 = vcmp.eq.s32.totalorder %v32_v11, %v1101_v3  ;;  %vm53_vm9 = vmor %vm40_vm4, %vm49_vm6  ;;  %vm62_vm10 = vcmp.eq.s32.totalorder %v31_v10, %v1102_v7  ;;  %vm63_vm11 = vcmp.eq.s32.totalorder %v32_v11, %v1102_v7  ;;  %vm39_vm14 = vcmp.eq.s32.totalorder %v30_v14, %v1100_v2  ;;  %v114_v23 = vld [vmem:[%s1936_s3 + $0x40] sm:$0xff]  ;;  %v1350_v26 = vld [vmem:[%s1935_s2 + $0x10] sm:$0xff]  }
   0x8   :  { %vm54_vm12 = vmor %vm41_vm5, %vm50_vm7  ;;  %vm48_vm15 = vcmp.eq.s32.totalorder %v30_v14, %v1101_v3  ;;  %vm60_vm3 = vcmp.eq.s32.totalorder %v29_v6, %v1102_v7  ;;  %vm61_vm5 = vcmp.eq.s32.totalorder %v30_v14, %v1102_v7  ;;  %v115_v27 = vld [vmem:[%s1936_s3 + $0x48] sm:$0xff]  ;;  %v116_v28 = vld [vmem:[%s1936_s3 + $0x50] sm:$0xff] }
   0x9   :  { %1263 = vmatmul.mubr.msk.f32.gmra.mxu0 %vm139_vm0, %v109_v12  ;;  %vm1472_vm13 = vmor %vm53_vm9, %vm62_vm10  ;;  %855 = vperm.xlu1 %1347, %v765_v24   ;;  %v764_v29 = vld [vmem:[%s1937_s4 + $0x68] sm:$0xff]  ;;  %v117_v30 = vld [vmem:[%s1936_s3 + $0x58] sm:$0xff] }
   0xa   :  { %1265 = vmatprep.mubr.msk.f32.mxu0 %vm139_vm0, %v110_v15  ;;  %vm67_vm2 = vmor %vm54_vm12, %vm63_vm11  ;;  %v118_v31 = vld [vmem:[%s1936_s3 + $0x60] sm:$0xff]  ;;  %v1351_v33 = vld [vmem:[%s1935_s2 + $0x18] sm:$0xff]  }
   0xb   :  { %vm1151_vm4 = vmpackc.low %vm67_vm2, %vm1472_vm13  ;;  %v763_v32 = vld [vmem:[%s1937_s4 + $0x60] sm:$0xff]  ;;  %v119_v35 = vld [vmem:[%s1936_s3 + $0x68] sm:$0xff] }
   0xc   :  { %1307 = vmatprep.subr.msk.bf16.mxu1 %vm1151_vm4, %v1387_v22  ;;  %vm52_vm6 = vmor %vm39_vm14, %vm48_vm15  ;;  %v1352_v34 = vld [vmem:[%s1935_s2 + $0x20] sm:$0xff]   ;;  %v120_v36 = vld [vmem:[%s1936_s3 + $0x70] sm:$0xff] }
   0xd   :  { %1266 = vmatmul.mubr.msk.f32.gmra.mxu0 %vm139_vm0, %v111_v17  ;;  %1308 = vmatpush3.bf16.msk.msra.mxu1 %vm1151_vm4, %v1387_v22  ;;  %vm64_vm7 = vmor %vm1463_vm8, %vm60_vm3  ;;  %v762_v37 = vld [vmem:[%s1937_s4 + $0x58] sm:$0xff]  ;;  %v122_v40 = vld [vmem:[%s1936_s3 + $0x80] sm:$0xff] }
   0xe   :  { %1268 = vmatprep.mubr.msk.f32.mxu0 %vm139_vm0, %v112_v19  ;;  %vm65_vm9 = vmor %vm52_vm6, %vm61_vm5  ;;  %850 = vperm.xlu1 %1347, %v764_v29   ;;  %v121_v38 = vld [vmem:[%s1936_s3 + $0x78] sm:$0xff]  ;;  %v761_v41 = vld [vmem:[%s1937_s4 + $0x50] sm:$0xff] }
   0xf   :  { %vm1153_vm10 = vmpackc.low %vm65_vm9, %vm64_vm7  ;;  %v782_v39 = vld [vmem:[%s1937_s4 + $0xf8] sm:$0xff]  ;;  %v1353_v43 = vld [vmem:[%s1935_s2 + $0x28] sm:$0xff]  }
  0x10   :  { %1309 = vmatprep.subr.msk.bf16.mxu1 %vm1153_vm10, %v1387_v22  ;;  %940 = vperm.xlu0 %1346, %v782_v39   ;;  %v766_v42 = vld [vmem:[%s1937_s4 + $0x78] sm:$0xff]  ;;  %v123_v44 = vld [vmem:[%s1936_s3 + $0x88] sm:$0xff]  ;;  %v1354_v45 = vld [vmem:[%s1935_s2 + $0x30] sm:$0xff]  }
  0x11   :  { %1269 = vmatmul.mubr.msk.f32.gmra.mxu0 %vm139_vm0, %v113_v21  ;;  %1310 = vmatpush3.bf16.msk.msra.mxu1 %vm1153_vm10, %v1387_v22  ;;  %v124_v46 = vld [vmem:[%s1936_s3 + $0x90] sm:$0xff]  ;;  %v760_v47 = vld [vmem:[%s1937_s4 + $0x48] sm:$0xff]  ;;  %v125_v49 = vld [vmem:[%s1936_s3 + $0x98] sm:$0xff] }
  0x12   :  { %1271 = vmatprep.mubr.msk.f32.mxu0 %vm139_vm0, %v114_v23  ;;  %845 = vperm.xlu1 %1347, %v763_v32   ;;  %v780_v48 = vld [vmem:[%s1937_s4 + $0xe8] sm:$0xff]  ;;  %v126_v50 = vld [vmem:[%s1936_s3 + $0xa0] sm:$0xff]  ;;  %v1355_v53 = vld [vmem:[%s1935_s2 + $0x38] sm:$0xff]  }
  0x13   :  { %v759_v51 = vld [vmem:[%s1937_s4 + $0x40] sm:$0xff]  ;;  %v127_v54 = vld [vmem:[%s1936_s3 + $0xa8] sm:$0xff]  ;;  %v128_v56 = vld [vmem:[%s1936_s3 + $0xb0] sm:$0xff] }
  0x14   :  { %1312 = vmatmul.mubr.msk.bf16.vlgmr.msra.gmra.mxu1 %vm541_vm1, %v1349_v25  ;;  %860 = vperm.xlu0 %1346, %v766_v42   ;;  %v779_v52 = vld [vmem:[%s1937_s4 + $0xe0] sm:$0xff]  ;;  %v758_v57 = vld [vmem:[%s1937_s4 + $0x38] sm:$0xff] }
  0x15   :  { %1272 = vmatmul.mubr.msk.f32.gmra.mxu0 %vm139_vm0, %v115_v27  ;;  %1315 = vmatprep.mubr.msk.bf16.mxu1 %vm541_vm1, %v1350_v26  ;;  %v1356_v55 = vld [vmem:[%s1935_s2 + $0x40] sm:$0xff]  }
  0x16   :  { %1274 = vmatprep.mubr.msk.f32.mxu0 %vm139_vm0, %v116_v28  ;;  %840 = vperm.xlu1 %1347, %v762_v37  }
  0x18   :  { %930 = vperm.xlu0 %1346, %v780_v48  }
  0x19   :  { %1275 = vmatmul.mubr.msk.f32.gmra.mxu0 %vm139_vm0, %v117_v30 }
  0x1a   :  { %1277 = vmatprep.mubr.msk.f32.mxu0 %vm139_vm0, %v118_v31  ;;  %835 = vperm.xlu1 %1347, %v761_v41  }
  0x1c   :  { %1316 = vmatmul.mubr.msk.bf16.gmra.mxu1 %vm541_vm1, %v1351_v33  ;;  %925 = vperm.xlu0 %1346, %v779_v52  }
  0x1d   :  { %1278 = vmatmul.mubr.msk.f32.gmra.mxu0 %vm139_vm0, %v119_v35  ;;  %1319 = vmatprep.mubr.msk.bf16.mxu1 %vm541_vm1, %v1352_v34 }
  0x1e   :  { %1280 = vmatprep.mubr.msk.f32.mxu0 %vm139_vm0, %v120_v36  ;;  %830 = vperm.xlu1 %1347, %v760_v47  }
  0x21   :  { %1281 = vmatmul.mubr.msk.f32.gmra.mxu0 %vm139_vm0, %v121_v38 }
  0x22   :  { %1283 = vmatprep.mubr.msk.f32.mxu0 %vm139_vm0, %v122_v40  ;;  %825 = vperm.xlu1 %1347, %v759_v51  }
  0x24   :  { %1320 = vmatmul.mubr.msk.bf16.gmra.mxu1 %vm541_vm1, %v1353_v43 }
  0x25   :  { %1284 = vmatmul.mubr.msk.f32.gmra.mxu0 %vm139_vm0, %v123_v44  ;;  %1323 = vmatprep.mubr.msk.bf16.mxu1 %vm541_vm1, %v1354_v45 }
  0x26   :  { %1286 = vmatprep.mubr.msk.f32.mxu0 %vm139_vm0, %v124_v46 }
  0x29   :  { %1287 = vmatmul.mubr.msk.f32.gmra.mxu0 %vm139_vm0, %v125_v49 }
  0x2a   :  { %1289 = vmatprep.mubr.msk.f32.mxu0 %vm139_vm0, %v126_v50 }
  0x2b   :  { %12 = vsyncpa [#allocation3], 0  ;;  %v778_v58 = vld [vmem:[%s1937_s4 + $0xd8] sm:$0xff]  ;;  %v130_v60 = vld [vmem:[%s1936_s3 + $0xc0] sm:$0xff]  ;;  %820 = vperm.xlu1 %1347, %v758_v57   ;;  %s1388_s19 = smov [#allocation2]  }
  0x2c   :  { %1324 = vmatmul.mubr.msk.bf16.gmra.mxu1 %vm541_vm1, %v1355_v53  ;;  %v129_v59 = vld [vmem:[%s1936_s3 + $0xb8] sm:$0xff]  ;;  %v757_v61 = vld [vmem:[%s1937_s4 + $0x30] sm:$0xff]  ;;  %920 = vperm.xlu0 %1346, %v778_v58   ;;  %v1357_v63 = vld [vmem:[%s1935_s2 + $0x48] sm:$0xff]   ;;  %s1092_s20 = sshll.u32 %s1388_s19, 4  ;;  %s1093_s20 = int_to_ptr.vmem [resolvable:$true] %s1092_s20 }
  0x2d   :  { %1290 = vmatmul.mubr.msk.f32.gmra.mxu0 %vm139_vm0, %v127_v54  ;;  %1327 = vmatprep.mubr.msk.bf16.mxu1 %vm541_vm1, %v1356_v55  ;;  %v777_v62 = vld [vmem:[%s1937_s4 + $0xd0] sm:$0xff]  ;;  %v131_v0 = vld [vmem:[%s1936_s3 + $0xc8] sm:$0xff]  ;;  %v133_v5 = vld [vmem:[%s1936_s3 + $0xd8] sm:$0xff]  ;;  %s1364_s21 = scalar_lea.vmem %s1093_s20, 128  ;;  %p1369_p1 = scmp.lt.s32.totalorder %s1093_s20, %s1093_s20 }
  0x2e   :  { %1292 = vmatprep.mubr.msk.f32.mxu0 %vm139_vm0, %v128_v56  ;;  %v1358_v1 = vld [vmem:[%s1935_s2 + $0x50] sm:$0xff]   ;;  %v756_v3 = vld [vmem:[%s1937_s4 + $0x28] sm:$0xff]  ;;  %v134_v6 = vld [vmem:[%s1936_s3 + $0xe0] sm:$0xff]  ;;  %p1365_p0 = scmp.ne.s32.totalorder %s1093_s20, %s1364_s21  ;;  %p1370_p2 = scmp.lt.s32.totalorder %s1364_s21, %s1364_s21 }
  0x2f   :  { %v132_v2 = vld [vmem:[%s1936_s3 + $0xd0] sm:$0xff]  ;;  %815 = vperm.xlu1 %1347, %v757_v61   ;;  %v776_v4 = vld [vmem:[%s1937_s4 + $0xc8] sm:$0xff]  ;;  %v755_v7 = vld [vmem:[%s1937_s4 + $0x20] sm:$0xff] }
  0x30   :  { %915 = vperm.xlu0 %1346, %v777_v62   ;;  %v775_v8 = vld [vmem:[%s1937_s4 + $0xc0] sm:$0xff]  ;;  %v1359_v9 = vld [vmem:[%s1935_s2 + $0x58] sm:$0xff]   ;;  %v135_v10 = vld [vmem:[%s1936_s3 + $0xe8] sm:$0xff]  ;;  %p1371_p3 = por %p1370_p2, %p1369_p1 }
  0x31   :  { %1293 = vmatmul.mubr.msk.f32.gmra.mxu0 %vm139_vm0, %v129_v59  ;;  %v1360_v11 = vld [vmem:[%s1935_s2 + $0x60] sm:$0xff]   ;;  %v136_v12 = vld [vmem:[%s1936_s3 + $0xf0] sm:$0xff]  ;;  %v754_v13 = vld [vmem:[%s1937_s4 + $0x18] sm:$0xff] }
  0x32   :  { %1295 = vmatprep.mubr.msk.f32.mxu0 %vm139_vm0, %v130_v60  ;;  %v774_v14 = vld [vmem:[%s1937_s4 + $0xb8] sm:$0xff]  ;;  %v753_v16 = vld [vmem:[%s1937_s4 + $0x10] sm:$0xff]  ;;  %v1361_v18 = vld [vmem:[%s1935_s2 + $0x68] sm:$0xff]   ;;  %p1372_p4 = pnand %p1371_p3, %p1365_p0 }
  0x33   :  { %810 = vperm.xlu1 %1347, %v756_v3   ;;  %v137_v15 = vld [vmem:[%s1936_s3 + $0xf8] sm:$0xff]  ;;  %v773_v17 = vld [vmem:[%s1937_s4 + $0xb0] sm:$0xff]  ;;  %v752_v20 = vld [vmem:[%s1937_s4 + $0x8] sm:$0xff] }
  0x34   :  { %1328 = vmatmul.mubr.msk.bf16.gmra.mxu1 %vm541_vm1, %v1357_v63  ;;  %910 = vperm.xlu0 %1346, %v776_v4   ;;  %v1362_v19 = vld [vmem:[%s1935_s2 + $0x70] sm:$0xff]   ;;  %v772_v21 = vld [vmem:[%s1937_s4 + $0xa8] sm:$0xff]  ;;  %v751_v22 = vld [vmem:[%s1937_s4] sm:$0xff] }
  0x35   :  { %1296 = vmatmul.mubr.msk.f32.gmra.mxu0 %vm139_vm0, %v131_v0  ;;  %1331 = vmatprep.mubr.msk.bf16.mxu1 %vm541_vm1, %v1358_v1  ;;  %v771_v23 = vld [vmem:[%s1937_s4 + $0xa0] sm:$0xff]  ;;  %v1363_v24 = vld [vmem:[%s1935_s2 + $0x78] sm:$0xff]   ;;  %v769_v26 = vld [vmem:[%s1937_s4 + $0x90] sm:$0xff] }
  0x36   :  { %1298 = vmatprep.mubr.msk.f32.mxu0 %vm139_vm0, %v132_v2  ;;  %v770_v25 = vld [vmem:[%s1937_s4 + $0x98] sm:$0xff]  ;;  %v768_v27 = vld [vmem:[%s1937_s4 + $0x88] sm:$0xff]  ;;  %v767_v28 = vld [vmem:[%s1937_s4 + $0x80] sm:$0xff] }
  0x37   :  { %805 = vperm.xlu1 %1347, %v755_v7   ;;  %v1009_v29 = vld [vmem:[%s1939_s6] sm:$0xff]  ;;  %v1008_v30 = vld [vmem:[%s1938_s5 + $0x8] sm:$0xff] }
  0x38   :  { %905 = vperm.xlu0 %1346, %v775_v8  }
  0x39   :  { %1299 = vmatmul.mubr.msk.f32.gmra.mxu0 %vm139_vm0, %v133_v5 }
  0x3a   :  { %1301 = vmatprep.mubr.msk.f32.mxu0 %vm139_vm0, %v134_v6 }
  0x3b   :  { %800 = vperm.xlu1 %1347, %v754_v13  }
  0x3c   :  { %1332 = vmatmul.mubr.msk.bf16.gmra.mxu1 %vm541_vm1, %v1359_v9  ;;  %900 = vperm.xlu0 %1346, %v774_v14  }
  0x3d   :  { %1302 = vmatmul.mubr.msk.f32.gmra.mxu0 %vm139_vm0, %v135_v10  ;;  %1335 = vmatprep.mubr.msk.bf16.mxu1 %vm541_vm1, %v1360_v11 }
  0x3e   :  { %1304 = vmatprep.mubr.msk.f32.mxu0 %vm139_vm0, %v136_v12 }
  0x3f   :  { %795 = vperm.xlu1 %1347, %v753_v16  }
  0x40   :  { %895 = vperm.xlu0 %1346, %v773_v17  }
  0x41   :  { %1305 = vmatmul.mubr.msk.f32.gmra.mxu0 %vm139_vm0, %v137_v15 }
  0x42   :  { %1079 = vmatprep.mubr.f32.mxu0 %v1008_v30 }
  0x43   :  { %790 = vperm.xlu1 %1347, %v752_v20  }
  0x44   :  { %1336 = vmatmul.mubr.msk.bf16.gmra.mxu1 %vm541_vm1, %v1361_v18  ;;  %890 = vperm.xlu0 %1346, %v772_v21  }
  0x45   :  { %1339 = vmatprep.mubr.msk.bf16.mxu1 %vm541_vm1, %v1362_v19 }
  0x47   :  { %785 = vperm.xlu1 %1347, %v751_v22  }
  0x48   :  { %885 = vperm.xlu0 %1346, %v771_v23  }
  0x4c   :  { %1340 = vmatmul.mubr.msk.bf16.gmra.mxu1 %vm541_vm1, %v1363_v24  ;;  %880 = vperm.xlu0 %1346, %v770_v25  }
  0x50   :  { %875 = vperm.xlu0 %1346, %v769_v26  }
  0x54   :  { %870 = vperm.xlu0 %1346, %v768_v27  }
  0x58   :  { %865 = vperm.xlu0 %1346, %v767_v28  }
  0x5c   :  { %1012 = vperm.xlu0 %1346, %v1009_v29  }
  0x80   :  { %v1747_v39 = vpop.permute.xlu1 %935 }
  0x84   :  { %v1761_v48 = vpop.permute.xlu1 %855 }
  0x89   :  { %v1777_v59 = vpop.permute.xlu1 %850 }
  0x8b   :  { %v1749_v40 = vpop.permute.xlu0 %940 }
  0x8d   :  { %v1789_v6 = vpop.permute.xlu1 %845 }
  0x8f   :  { %v1763_v50 = vpop.permute.xlu0 %860 }
  0x91   :  { %v1805_v14 = vpop.permute.xlu1 %840 }
  0x93   :  { %v1779_v61 = vpop.permute.xlu0 %930 }
  0x95   :  { %v1817_v22 = vpop.permute.xlu1 %835 }
  0x97   :  { %v1793_v8 = vpop.permute.xlu0 %925 }
  0xa7   :  { %v1809_v16 = vpop.permute.xlu0 %920 }
  0xab   :  { %v1819_v24 = vpop.permute.xlu0 %915 }
  0xc5   :  { %v1261_v31 = vpop.f32.mrf.mxu0 }
  0xc7   :  { %v302_v32 = vpop.f32.mrf.mxu0 }
  0xc9   :  { %v1264_v33 = vpop.f32.mrf.mxu0 }
  0xcb   :  { %v312_v34 = vpop.f32.mrf.mxu0 }
  0xcd   :  { %v1267_v35 = vpop.f32.mrf.mxu0 }
  0xcf   :  { %v322_v36 = vpop.f32.mrf.mxu0 }
  0xd1   :  { %v1270_v37 = vpop.f32.mrf.mxu0 }
  0xd3   :  { %v332_v38 = vpop.f32.mrf.mxu0 }
  0xd4   :  { %v1313_v42 = vpop.f32.mrf.mxu1 }
  0xd5   :  { %v1751_v41 = vpop.f32.mrf.mxu0  ;;  %v1753_v43 = vadd.f32 %v1313_v42, %v312_v34 }
  0xd6   :  { %v624_v45 = vpop.f32.mrf.mxu1 }
  0xd7   :  { %1945 = vst [vmem:[#allocation5_spill] sm:$0xff] %v1753_v43  ;;  %v1755_v44 = vpop.f32.mrf.mxu0  ;;  %v1757_v46 = vadd.f32 %v624_v45, %v302_v32  ;;  %v1833_v32 = vpop.permute.xlu0 %910 }
  0xd8   :  { %v1314_v49 = vpop.f32.mrf.mxu1 }
  0xd9   :  { %1946 = vst [vmem:[#allocation6_spill] sm:$0xff] %v1757_v46  ;;  %v1759_v47 = vpop.f32.mrf.mxu0  ;;  %v1765_v51 = vadd.f32 %v1314_v49, %v1264_v33 }
  0xda   :  { %v627_v53 = vpop.f32.mrf.mxu1 }
  0xdb   :  { %1947 = vst [vmem:[#allocation7_spill] sm:$0xff] %v1765_v51  ;;  %v1767_v52 = vpop.f32.mrf.mxu0  ;;  %v1769_v54 = vadd.f32 %v1261_v31, %v627_v53  ;;  %v1831_v31 = vpop.permute.xlu1 %830 }
  0xdc   :  { %v1317_v56 = vpop.f32.mrf.mxu1  ;;  %v1843_v42 = vpop.permute.xlu0 %905 }
  0xdd   :  { %1948 = vst [vmem:[#allocation8_spill] sm:$0xff] %v1769_v54  ;;  %v1771_v55 = vpop.f32.mrf.mxu0  ;;  %v1773_v57 = vadd.f32 %v1317_v56, %v332_v38 }
  0xde   :  { %v640_v60 = vpop.f32.mrf.mxu1 }
  0xdf   :  { %1949 = vst [vmem:[#allocation9_spill] sm:$0xff] %v1773_v57  ;;  %v1775_v58 = vpop.f32.mrf.mxu0  ;;  %v1781_v62 = vadd.f32 %v640_v60, %v322_v36  ;;  %v1841_v38 = vpop.permute.xlu1 %825 }
  0xe0   :  { %v1318_v0 = vpop.f32.mrf.mxu1 }
  0xe1   :  { %1950 = vst [vmem:[#allocation10_spill] sm:$0xff] %v1781_v62  ;;  %v1282_v63 = vpop.f32.mrf.mxu0  ;;  %v1783_v1 = vadd.f32 %v1318_v0, %v1270_v37  ;;  %v1853_v0 = vpop.permute.xlu0 %900 }
  0xe2   :  { %v643_v3 = vpop.f32.mrf.mxu1 }
  0xe3   :  { %1951 = vst [vmem:[#allocation11_spill] sm:$0xff] %v1783_v1  ;;  %v372_v2 = vpop.f32.mrf.mxu0  ;;  %v1785_v4 = vadd.f32 %v1267_v35, %v643_v3  ;;  %v1851_v60 = vpop.permute.xlu1 %820 }
  0xe4   :  { %v1791_v7 = vpop.f32.mrf.mxu1  ;;  %1965 = vst [vmem:[#allocation25_spill] sm:$0xff] %v1851_v60 }
  0xe5   :  { %1952 = vst [vmem:[#allocation12_spill] sm:$0xff] %v1785_v4  ;;  %v1787_v5 = vpop.f32.mrf.mxu0  ;;  %v1857_v51 = vpop.permute.xlu0 %895 }
  0xe6   :  { %1953 = vst [vmem:[#allocation13_spill] sm:$0xff] %v1787_v5  ;;  %v1797_v10 = vpop.f32.mrf.mxu1  ;;  %1967 = vst [vmem:[#allocation27_spill] sm:$0xff] %v1857_v51 }
  0xe7   :  { %v1795_v9 = vpop.f32.mrf.mxu0 }
  0xe8   :  { %1954 = vst [vmem:[#allocation14_spill] sm:$0xff] %v1795_v9  ;;  %v1801_v12 = vpop.f32.mrf.mxu1  ;;  %v1855_v9 = vpop.permute.xlu1 %815 }
  0xe9   :  { %v1799_v11 = vpop.f32.mrf.mxu0  ;;  %1966 = vst [vmem:[#allocation26_spill] sm:$0xff] %v1855_v9 }
  0xea   :  { %1955 = vst [vmem:[#allocation15_spill] sm:$0xff] %v1799_v11  ;;  %v1807_v15 = vpop.f32.mrf.mxu1  ;;  %v1861_v11 = vpop.permute.xlu0 %890 }
  0xeb   :  { %v1803_v13 = vpop.f32.mrf.mxu0 }
  0xec   :  { %1956 = vst [vmem:[#allocation16_spill] sm:$0xff] %v1803_v13  ;;  %v1325_v18 = vpop.f32.mrf.mxu1  ;;  %v1859_v4 = vpop.permute.xlu1 %810 }
  0xed   :  { %v1811_v17 = vpop.f32.mrf.mxu0  ;;  %v681_v57 = vadd.f32 %v1325_v18, %v372_v2 }
  0xee   :  { %1957 = vst [vmem:[#allocation17_spill] sm:$0xff] %v1811_v17  ;;  %v672_v20 = vpop.f32.mrf.mxu1 }
  0xef   :  { %v1813_v19 = vpop.f32.mrf.mxu0 }
  0xf0   :  { %1958 = vst [vmem:[#allocation18_spill] sm:$0xff] %v1813_v19  ;;  %v1326_v23 = vpop.f32.mrf.mxu1 }
  0xf1   :  { %v1815_v21 = vpop.f32.mrf.mxu0 }
  0xf2   :  { %v675_v26 = vpop.f32.mrf.mxu1 }
  0xf3   :  { %v1821_v25 = vpop.f32.mrf.mxu0  ;;  %v676_v1 = vadd.f32 %v1771_v55, %v675_v26  ;;  %v668_v55 = vadd.f32 %v1801_v12, %v1759_v47 }
  0xf4   :  { %v1825_v28 = vpop.f32.mrf.mxu1 }
  0xf5   :  { %v1823_v27 = vpop.f32.mrf.mxu0  ;;  %1959 = vst [vmem:[#allocation19_spill] sm:$0xff] %v1825_v28  ;;  %v684_v28 = vadd.f32 %v1326_v23, %v1282_v63  ;;  %v957_v23 = vadd.f32 %v1761_v48, %v681_v57  ;;  %v665_v57 = vadd.f32 %v1791_v7, %v1767_v52 }
  0xf6   :  { %v1829_v30 = vpop.f32.mrf.mxu1 }
  0xf7   :  { %v1827_v29 = vpop.f32.mrf.mxu0  ;;  %1960 = vst [vmem:[#allocation20_spill] sm:$0xff] %v1829_v30  ;;  %v958_v60 = vadd.f32 %v1763_v50, %v684_v28  ;;  %v1872_v50 = vpop.permute.xlu0 %885  ;;  %v953_v12 = vadd.f32 %v1817_v22, %v665_v57  ;;  %v1969_v28 = vld [vmem:[#allocation17_spill] sm:$0xff] }
  0xf8   :  { %v1835_v33 = vpop.f32.mrf.mxu1 }
  0xf9   :  { %1961 = vst [vmem:[#allocation21_spill] sm:$0xff] %v1835_v33  ;;  %v1300_v34 = vpop.f32.mrf.mxu0 }
  0xfa   :  { %v1837_v35 = vpop.f32.mrf.mxu1 }
  0xfb   :  { %1962 = vst [vmem:[#allocation22_spill] sm:$0xff] %v1837_v35  ;;  %v432_v37 = vpop.f32.mrf.mxu0 }
  0xfc   :  { %v1839_v36 = vpop.f32.mrf.mxu1 }
  0xfd   :  { %v1303_v53 = vpop.f32.mrf.mxu0 }
  0xfe   :  { %v1845_v45 = vpop.f32.mrf.mxu1 }
  0xff   :  { %1963 = vst [vmem:[#allocation23_spill] sm:$0xff] %v1845_v45  ;;  %v442_v46 = vpop.f32.mrf.mxu0 }
 0x100   :  { %v1847_v49 = vpop.f32.mrf.mxu1 }
 0x101   :  { %v1306_v30 = vpop.f32.mrf.mxu0 }
 0x102   :  { %v1849_v56 = vpop.f32.mrf.mxu1 }
 0x103   :  { %1964 = vst [vmem:[#allocation24_spill] sm:$0xff] %v1849_v56  ;;  %v452_v35 = vpop.f32.mrf.mxu0 }
 0x104   :  { %v1337_v3 = vpop.f32.mrf.mxu1 }
 0x106   :  { %v720_v54 = vpop.f32.mrf.mxu1 }
 0x107   :  { %v721_v7 = vadd.f32 %v720_v54, %v1827_v29 }
 0x108   :  { %v1338_v43 = vpop.f32.mrf.mxu1 }
 0x109   :  { %v732_v2 = vadd.f32 %v1338_v43, %v1300_v34  ;;  %v989_v43 = vmax.f32 %v957_v23, 0.0  ;;  %v1978_v23 = vld [vmem:[#allocation21_spill] sm:$0xff] }
 0x10a   :  { %v723_v5 = vpop.f32.mrf.mxu1 }
 0x10c   :  { %v1341_v62 = vpop.f32.mrf.mxu1 }
 0x10d   :  { %v745_v33 = vadd.f32 %v1341_v62, %v452_v35  ;;  %v673_v62 = vadd.f32 %v672_v20, %v1775_v58  ;;  %v1869_v35 = vpop.permute.xlu1 %805  ;;  %v713_v20 = vadd.f32 %v1839_v36, %v1821_v25 }
 0x10e   :  { %v736_v13 = vpop.f32.mrf.mxu1 }
 0x10f   :  { %v973_v51 = vadd.f32 %v1747_v39, %v745_v33  ;;  %v737_v17 = vadd.f32 %v736_v13, %v442_v46  ;;  %v990_v39 = vmax.f32 %v958_v60, 0.0  ;;  %v956_v46 = vadd.f32 %v1777_v59, %v676_v1  ;;  %v1971_v33 = vld [vmem:[#allocation25_spill] sm:$0xff]  ;;  %v1976_v60 = vld [vmem:[#allocation26_spill] sm:$0xff] }
 0x110   :  { %v1342_v45 = vpop.f32.mrf.mxu1  ;;  %v955_v58 = vadd.f32 %v1789_v6, %v673_v62  ;;  %v724_v13 = vadd.f32 %v1823_v27, %v723_v5  ;;  %v954_v59 = vadd.f32 %v1805_v14, %v668_v55  ;;  %v657_v5 = vadd.f32 %v1797_v10, %v1755_v44  ;;  %v1968_v27 = vld [vmem:[#allocation24_spill] sm:$0xff] }
 0x111   :  { %v748_v19 = vadd.f32 %v1342_v45, %v1306_v30  ;;  %v971_v48 = vadd.f32 %v1793_v8, %v737_v17  ;;  %v988_v1 = vmax.f32 %v956_v46, 0.0  ;;  %v801_v8 = vpop.permute.xlu1 %800  ;;  %v967_v44 = vadd.f32 %v1843_v42, %v721_v7  ;;  %v1973_v45 = vld [vmem:[#allocation18_spill] sm:$0xff]  ;;  %v1979_v55 = vld [vmem:[#allocation12_spill] sm:$0xff] }
 0x112   :  { %v739_v9 = vpop.f32.mrf.mxu1  ;;  %v987_v17 = vmax.f32 %v955_v58, 0.0  ;;  %v985_v10 = vmax.f32 %v953_v12, 0.0  ;;  %v708_v29 = vadd.f32 %v1969_v28, %v1968_v27  ;;  %v1990_v27 = vld [vmem:[#allocation6_spill] sm:$0xff] }
 0x113   :  { %v974_v56 = vadd.f32 %v1749_v40, %v748_v19  ;;  %v740_v63 = vadd.f32 %v1303_v53, %v739_v9  ;;  %v729_v40 = vadd.f32 %v1337_v3, %v432_v37  ;;  %v1005_v9 = vmax.f32 %v973_v51, 0.0  ;;  %v1972_v37 = vld [vmem:[#allocation27_spill] sm:$0xff] }
 0x114   :  { %v660_v51 = vadd.f32 %v1751_v41, %v1807_v15  ;;  %v1003_v6 = vmax.f32 %v971_v48, 0.0  ;;  %v716_v41 = vadd.f32 %v1847_v49, %v1815_v21  ;;  %v968_v15 = vadd.f32 %v1833_v32, %v724_v13  ;;  %v1974_v49 = vld [vmem:[#allocation23_spill] sm:$0xff] }
 0x115   :  { %v1006_v18 = vmax.f32 %v974_v56, 0.0  ;;  %v972_v30 = vadd.f32 %v1779_v61, %v740_v63  ;;  %v970_v61 = vadd.f32 %v1809_v16, %v732_v2  ;;  %v969_v52 = vadd.f32 %v1819_v24, %v729_v40  ;;  %v881_v16 = vpop.permute.xlu0 %880  ;;  %v796_v21 = vpop.permute.xlu1 %795  ;;  %v1975_v56 = vld [vmem:[#allocation9_spill] sm:$0xff]  ;;  %v1977_v63 = vld [vmem:[#allocation15_spill] sm:$0xff]  ;;  %v1980_v40 = vld [vmem:[#allocation16_spill] sm:$0xff] }
 0x116   :  { %v986_v19 = vmax.f32 %v954_v59, 0.0  ;;  %v952_v54 = vadd.f32 %v1831_v31, %v660_v51  ;;  %v951_v24 = vadd.f32 %v1841_v38, %v657_v5  ;;  %v966_v26 = vadd.f32 %v1853_v0, %v716_v41  ;;  %v1970_v31 = vld [vmem:[#allocation11_spill] sm:$0xff]  ;;  %v1983_v59 = vld [vmem:[#allocation22_spill] sm:$0xff]  ;;  %v1984_v51 = vld [vmem:[#allocation13_spill] sm:$0xff] }
 0x117   :  { %1222 = vmatprep.subr.mxu0 %v1006_v18  ;;  %v1004_v47 = vmax.f32 %v972_v30, 0.0  ;;  %v1002_v14 = vmax.f32 %v970_v61, 0.0  ;;  %v1001_v22 = vmax.f32 %v969_v52, 0.0  ;;  %v1000_v32 = vmax.f32 %v968_v15, 0.0  ;;  %v1982_v61 = vld [vmem:[#allocation10_spill] sm:$0xff]  ;;  %v1985_v52 = vld [vmem:[#allocation7_spill] sm:$0xff] }
 0x118   :  { %1223 = vmatpush3.msra.mxu0 %v990_v39  ;;  %v950_v34 = vadd.f32 %v1971_v33, %v1970_v31  ;;  %v984_v25 = vmax.f32 %v952_v54, 0.0  ;;  %v965_v42 = vadd.f32 %v1972_v37, %v713_v20  ;;  %v705_v38 = vadd.f32 %v1974_v49, %v1973_v45  ;;  %v1986_v5 = vld [vmem:[#allocation14_spill] sm:$0xff]  ;;  %v1007_v33 = vld [vmem:[%s1938_s5] sm:$0xff] }
 0x119   :  { %1224 = vmatprep.subr.mxu0 %v1005_v9  ;;  %v876_v36 = vpop.permute.xlu0 %875  ;;  %v999_v53 = vmax.f32 %v967_v44, 0.0  ;;  %v949_v0 = vadd.f32 %v1976_v60, %v1975_v56  ;;  %v983_v3 = vmax.f32 %v951_v24, 0.0  ;;  %v700_v62 = vadd.f32 %v1978_v23, %v1977_v63  ;;  %v791_v46 = vpop.permute.xlu1 %790  ;;  %v1981_v9 = vld [vmem:[#allocation19_spill] sm:$0xff] }
 0x11a   :  { %1225 = vmatpush3.msra.mxu0 %v989_v43  ;;  %v998_v2 = vmax.f32 %v966_v26, 0.0  ;;  %v964_v18 = vadd.f32 %v1861_v11, %v708_v29  ;;  %v982_v30 = vmax.f32 %v950_v34, 0.0  ;;  %v948_v39 = vadd.f32 %v1859_v4, %v1979_v55 }
 0x11b   :  { %1226 = vmatprep.subr.mxu0 %v1004_v47  ;;  %v697_v48 = vadd.f32 %v1981_v9, %v1980_v40  ;;  %v997_v57 = vmax.f32 %v965_v42, 0.0  ;;  %v963_v43 = vadd.f32 %v1872_v50, %v705_v38  ;;  %v981_v58 = vmax.f32 %v949_v0, 0.0  ;;  %v1987_v50 = vld [vmem:[#allocation20_spill] sm:$0xff] }
 0x11c   :  { %1227 = vmatpush3.msra.mxu0 %v988_v1  ;;  %v947_v13 = vadd.f32 %v1869_v35, %v1982_v61  ;;  %v962_v11 = vadd.f32 %v881_v16, %v700_v62  ;;  %v692_v1 = vadd.f32 %v1984_v51, %v1983_v59  ;;  %v996_v4 = vmax.f32 %v964_v18, 0.0 }
 0x11d   :  { %1228 = vmatprep.subr.mxu0 %v1003_v6  ;;  %v871_v47 = vpop.permute.xlu0 %870  ;;  %v946_v7 = vadd.f32 %v801_v8, %v1985_v52  ;;  %v980_v6 = vmax.f32 %v948_v39, 0.0  ;;  %v961_v12 = vadd.f32 %v876_v36, %v697_v48  ;;  %v995_v41 = vmax.f32 %v963_v43, 0.0  ;;  %v786_v16 = vpop.permute.xlu1 %785 }
 0x11e   :  { %1229 = vmatpush3.msra.mxu0 %v987_v17  ;;  %v689_v17 = vadd.f32 %v1987_v50, %v1986_v5  ;;  %v979_v15 = vmax.f32 %v947_v13, 0.0  ;;  %v960_v54 = vadd.f32 %v871_v47, %v692_v1  ;;  %v943_v28 = vadd.f32 %v786_v16, %v1990_v27 }
 0x11f   :  { %1230 = vmatprep.subr.mxu0 %v1002_v14  ;;  %v1988_v14 = vld [vmem:[#allocation5_spill] sm:$0xff]  ;;  %v978_v20 = vmax.f32 %v946_v7, 0.0 }
 0x120   :  { %1231 = vmatpush3.msra.mxu0 %v986_v19  ;;  %v945_v35 = vadd.f32 %v796_v21, %v1988_v14  ;;  %v994_v19 = vmax.f32 %v962_v11, 0.0  ;;  %v992_v29 = vmax.f32 %v960_v54, 0.0  ;;  %v975_v31 = vmax.f32 %v943_v28, 0.0 }
 0x121   :  { %1232 = vmatprep.subr.mxu0 %v1001_v22  ;;  %v1989_v22 = vld [vmem:[#allocation8_spill] sm:$0xff]  ;;  %v866_v8 = vpop.permute.xlu0 %865 }
 0x122   :  { %1233 = vmatpush3.msra.mxu0 %v985_v10  ;;  %v944_v44 = vadd.f32 %v791_v46, %v1989_v22  ;;  %v993_v10 = vmax.f32 %v961_v12, 0.0  ;;  %v959_v24 = vadd.f32 %v866_v8, %v689_v17  ;;  %v977_v26 = vmax.f32 %v945_v35, 0.0 }
 0x123   :  { %1234 = vmatprep.subr.mxu0 %v1000_v32 }
 0x124   :  { %1235 = vmatpush3.msra.mxu0 %v984_v25  ;;  %v976_v21 = vmax.f32 %v944_v44, 0.0  ;;  %v991_v32 = vmax.f32 %v959_v24, 0.0 }
 0x125   :  { %1236 = vmatprep.subr.mxu0 %v999_v53  ;;  %v1013_v37 = vpop.permute.xlu0 %1012 }
 0x126   :  { %1237 = vmatpush3.msra.mxu0 %v983_v3 }
 0x127   :  { %1238 = vmatprep.subr.mxu0 %v998_v2 }
 0x128   :  { %1239 = vmatpush3.msra.mxu0 %v982_v30 }
 0x129   :  { %1240 = vmatprep.subr.mxu0 %v997_v57 }
 0x12a   :  { %1241 = vmatpush3.msra.mxu0 %v981_v58 }
 0x12b   :  { %1242 = vmatprep.subr.mxu0 %v996_v4 }
 0x12c   :  { %1243 = vmatpush3.msra.mxu0 %v980_v6 }
 0x12d   :  { %1244 = vmatprep.subr.mxu0 %v995_v41 }
 0x12e   :  { %1245 = vmatpush3.msra.mxu0 %v979_v15 }
 0x12f   :  { %1246 = vmatprep.subr.mxu0 %v994_v19 }
 0x130   :  { %1247 = vmatpush3.msra.mxu0 %v978_v20 }
 0x131   :  { %1248 = vmatprep.subr.mxu0 %v993_v10 }
 0x132   :  { %1249 = vmatpush3.msra.mxu0 %v977_v26 }
 0x133   :  { %1250 = vmatprep.subr.mxu0 %v992_v29 }
 0x134   :  { %1251 = vmatpush3.msra.mxu0 %v976_v21 }
 0x135   :  { %1252 = vmatprep.subr.mxu0 %v991_v32 }
 0x136   :  { %1253 = vmatpush3.msra.mxu0 %v975_v31 }
 0x137   :  { %1080 = vmatmul.mubr.f32.vlgmr.msra.gmra.mxu0 %v1007_v33 }
 0x1f7   :  { %v1254_v34 = vpop.f32.mrf.mxu0 }
 0x1f9   :  { %v1255_v25 = vpop.f32.mrf.mxu0 }
 0x1fa   :  { %v1256_v36 = vadd.f32 %v1255_v25, %v1254_v34 }
 0x1fc   :  { %v1082_v42 = vadd.f32 %v1256_v36, %v1013_v37 }
 0x1fe   :  { %1085 = vst [vmem:[#allocation2] sm:$0xff] %v1082_v42 }
 0x1ff   :  { %1375 = shalt.err (!%p1372_p4)
}
 0x200   :  { %1095 = dma.vmem_to_hbm [thread:$0]  %s1093_s20, 128, %s1940_s7, [#allocation3]  }
 0x201   :  { %1384 = dma.done.wait [#allocation3], 128  }
 0x202   :  { %1385 = vsyncadd [#allocation3], 4294967168 }
 0x203   :  { %1099 = vsyncpa [#allocation3], 1 }

</bundles_post_ra>
